<compile_context>
chip_gen: v6e
topology: v6e:2x2x1
jax: 0.10.0
libtpu: 0.0.40
codegen_flags: <defaults>
</compile_context>

<pallas_src>
import jax
import jax.numpy as jnp
from jax.experimental import pallas as pl
from jax.experimental.pallas import tpu as pltpu

_LANES = 128


def _round_up(n, m):
    return ((n + m - 1) // m) * m


def _mlp_kernel(x_ref,
                w1_ref, w2_ref, w3_ref, w4_ref,
                b_ref,
                out_ref):
    """Fused 4-layer MLP for one batch tile (all weights resident in VMEM)."""
    f32 = jnp.float32
    bf16 = jnp.bfloat16

    x = x_ref[...]                      # already bf16 (cast once, wrapper-side)

    # fc1 + ReLU   (dropout1 == identity in eval mode)
    h = jnp.dot(x, w1_ref[...], preferred_element_type=f32)
    h = jnp.maximum(h + b_ref[0:1, :w1_ref.shape[1]], 0.0).astype(bf16)

    # fc2 + ReLU   (dropout2 == identity in eval mode)
    h = jnp.dot(h, w2_ref[...], preferred_element_type=f32)
    h = jnp.maximum(h + b_ref[1:2, :w2_ref.shape[1]], 0.0).astype(bf16)

    # fc3 + ReLU   (dropout3 == identity in eval mode)
    h = jnp.dot(h, w3_ref[...], preferred_element_type=f32)
    h = jnp.maximum(h + b_ref[2:3, :w3_ref.shape[1]], 0.0).astype(bf16)

    # fc4 + sigmoid (padded columns produce sigmoid(0)=0.5; sliced off outside)
    logits = jnp.dot(h, w4_ref[...], preferred_element_type=f32)
    logits = logits + b_ref[3:4, :w4_ref.shape[1]]
    out_ref[...] = jax.nn.sigmoid(logits).astype(out_ref.dtype)


def neural_network_forward(x, params, *, batch_tile=512):
    """Run the fused MLP Pallas kernel.

    x: (B, inputSize) float32
    params: dict with w1..w4 of shape (in, out) and b1..b4 of shape (1, out)
            (transpose of PyTorch's (out, in) Linear weights).
    """
    w1, b1 = params["w1"], params["b1"]
    w2, b2 = params["w2"], params["b2"]
    w3, b3 = params["w3"], params["b3"]
    w4, b4 = params["w4"], params["b4"]

    B, d_in = x.shape
    h1, h2, h3, nc = w1.shape[1], w2.shape[1], w3.shape[1], w4.shape[1]

    # ---- pad every output width to a lane multiple (128) ----
    h1p, h2p, h3p, ncp = (_round_up(d, _LANES) for d in (h1, h2, h3, nc))
    maxw = max(h1p, h2p, h3p, ncp)

    def pad_w(w, rows_p, cols_p):
        r, c = w.shape
        return jnp.pad(w, ((0, rows_p - r), (0, cols_p - c))).astype(jnp.bfloat16)

    w1p = pad_w(w1, d_in, h1p)
    w2p = pad_w(w2, h1p, h2p)
    w3p = pad_w(w3, h2p, h3p)
    w4p = pad_w(w4, h3p, ncp)

    # Pack the four biases (f32) into one (4, maxw) array, zero-padded.
    def pad_b(b):
        b = b.reshape(1, -1).astype(jnp.float32)
        return jnp.pad(b, ((0, 0), (0, maxw - b.shape[1])))

    b_packed = jnp.concatenate([pad_b(b1), pad_b(b2), pad_b(b3), pad_b(b4)], axis=0)

    # ---- batch tiling: big tiles, pad ragged batches with zero rows ----
    bt = min(batch_tile, _round_up(B, 8))       # tiny batch -> one grid step
    Bp = _round_up(B, bt)
    xb = x.astype(jnp.bfloat16)                 # bf16 once, halves x DMA traffic
    if Bp != B:
        xb = jnp.pad(xb, ((0, Bp - B), (0, 0)))
    grid = (Bp // bt,)

    # Advisory cost hint so XLA schedules this small custom call sensibly.
    flops = 2 * Bp * (d_in * h1p + h1p * h2p + h2p * h3p + h3p * ncp)
    bytes_accessed = (xb.size * 2
                      + (w1p.size + w2p.size + w3p.size + w4p.size) * 2
                      + b_packed.size * 4
                      + Bp * ncp * 4)
    cost = pl.CostEstimate(flops=flops,
                           transcendentals=Bp * ncp,
                           bytes_accessed=bytes_accessed)

    # Weights/biases use constant index_maps so they stay VMEM-resident across
    # batch tiles.  (At toy sizes VMEM is a non-issue; when scaling hidden dims
    # up on v7x (64 MiB VMEM), budget 2x weight bytes for the default double
    # buffer or lower the buffer count on these grid-invariant specs.)
    def full_spec(arr):
        return pl.BlockSpec(arr.shape, lambda i: (0,) * arr.ndim)

    out_padded = pl.pallas_call(
        _mlp_kernel,
        out_shape=jax.ShapeDtypeStruct((Bp, ncp), jnp.float32),
        grid_spec=pltpu.PrefetchScalarGridSpec(
            num_scalar_prefetch=0,
            grid=grid,
            in_specs=[
                pl.BlockSpec((bt, d_in), lambda i: (i, 0)),
                full_spec(w1p), full_spec(w2p), full_spec(w3p), full_spec(w4p),
                full_spec(b_packed),
            ],
            out_specs=pl.BlockSpec((bt, ncp), lambda i: (i, 0)),
        ),
        compiler_params=pltpu.CompilerParams(
            dimension_semantics=("parallel",),   # megacore-shards batch on v7x
            vmem_limit_bytes=32 * 1024 * 1024,
        ),
        cost_estimate=cost,
    )(xb, w1p, w2p, w3p, w4p, b_packed)

    # Drop batch padding and lane padding (padded classes are sigmoid(0)=0.5).
    return out_padded[:B, :nc]


def init_params(key, input_size, h1, h2, h3, num_classes):
    """Deterministic param init (uniform ±1/sqrt(fan_in), PyTorch-Linear style)."""
    dims = [(input_size, h1), (h1, h2), (h2, h3), (h3, num_classes)]
    params = {}
    for idx, (fan_in, fan_out) in enumerate(dims, start=1):
        key, kw, kb = jax.random.split(key, 3)
        bound = 1.0 / jnp.sqrt(float(fan_in))
        params[f"w{idx}"] = jax.random.uniform(
            kw, (fan_in, fan_out), jnp.float32, -bound, bound)
        params[f"b{idx}"] = jax.random.uniform(
            kb, (1, fan_out), jnp.float32, -bound, bound)
    return params


def _reference_forward_f32(x, p):
    """Pure-f32 JAX reference (eval-mode dropout)."""
    h = jnp.maximum(x @ p["w1"] + p["b1"], 0.0)
    h = jnp.maximum(h @ p["w2"] + p["b2"], 0.0)
    h = jnp.maximum(h @ p["w3"] + p["b3"], 0.0)
    return jax.nn.sigmoid(h @ p["w4"] + p["b4"])


def _reference_forward_bf16(x, p):
    """Pure-JAX reference matching the kernel's bf16-in / f32-accumulate math."""
    bf16, f32 = jnp.bfloat16, jnp.float32
    h = x.astype(bf16)
    for i in (1, 2, 3):
        h = jnp.dot(h, p[f"w{i}"].astype(bf16), preferred_element_type=f32)
        h = jnp.maximum(h + p[f"b{i}"], 0.0).astype(bf16)
    logits = jnp.dot(h, p["w4"].astype(bf16), preferred_element_type=f32) + p["b4"]
    return jax.nn.sigmoid(logits)


if __name__ == "__main__":
    key = jax.random.PRNGKey(0)

    # Small shapes consistent with the module's constructor.
    B, input_size = 16, 32
    h1, h2, h3, num_classes = 64, 48, 40, 10

    key, kx = jax.random.split(key)
    x = jax.random.normal(kx, (B, input_size), jnp.float32)
    params = init_params(key, input_size, h1, h2, h3, num_classes)

    out = neural_network_forward(x, params)
    out = jax.block_until_ready(out)

    ref_bf16 = _reference_forward_bf16(x, params)
    ref_f32 = _reference_forward_f32(x, params)

    assert out.shape == (B, num_classes)
    assert jnp.allclose(out, ref_bf16, atol=2e-3, rtol=2e-3), \
        "mismatch vs bf16-matched JAX reference"
    assert jnp.allclose(out, ref_f32, atol=5e-2), \
        "mismatch vs f32 JAX reference (semantics)"

    print("KERNEL_OK")
</pallas_src>

<mosaic_0001>
module attributes {stable_mosaic.version = 11 : i64} {
  func.func @_mlp_kernel(%arg0: i32, %arg1: memref<16x32xbf16, #tpu.memory_space<vmem>>, %arg2: memref<32x128xbf16, #tpu.memory_space<vmem>>, %arg3: memref<128x128xbf16, #tpu.memory_space<vmem>>, %arg4: memref<128x128xbf16, #tpu.memory_space<vmem>>, %arg5: memref<128x128xbf16, #tpu.memory_space<vmem>>, %arg6: memref<4x128xf32, #tpu.memory_space<vmem>>, %arg7: memref<16x128xf32, #tpu.memory_space<vmem>>) attributes {dimension_semantics = [#tpu.dimension_semantics<parallel>], iteration_bounds = array<i64: 1>, scalar_prefetch = 0 : i64, scratch_operands = 0 : i64, tpu.core_type = #tpu.core_type<tc>, window_params = [{transform_indices = @transform_0, window_bounds = array<i64: 16, 32>}, {pipeline_mode = #tpu.pipeline_mode<synchronous>, transform_indices = @transform_1, window_bounds = array<i64: 32, 128>}, {pipeline_mode = #tpu.pipeline_mode<synchronous>, transform_indices = @transform_2, window_bounds = array<i64: 128, 128>}, {pipeline_mode = #tpu.pipeline_mode<synchronous>, transform_indices = @transform_3, window_bounds = array<i64: 128, 128>}, {pipeline_mode = #tpu.pipeline_mode<synchronous>, transform_indices = @transform_4, window_bounds = array<i64: 128, 128>}, {pipeline_mode = #tpu.pipeline_mode<synchronous>, transform_indices = @transform_5, window_bounds = array<i64: 4, 128>}, {transform_indices = @transform_6, window_bounds = array<i64: 16, 128>}]} {
    %c0 = arith.constant 0 : index
    %c0_0 = arith.constant 0 : index
    %0 = vector.load %arg1[%c0, %c0_0] : memref<16x32xbf16, #tpu.memory_space<vmem>>, vector<16x32xbf16>
    %c0_1 = arith.constant 0 : index
    %c0_2 = arith.constant 0 : index
    %1 = vector.load %arg2[%c0_1, %c0_2] : memref<32x128xbf16, #tpu.memory_space<vmem>>, vector<32x128xbf16>
    %cst = arith.constant dense<0.000000e+00> : vector<16x128xf32>
    %2 = tpu.matmul %0, %1, %cst {dimension_numbers = #tpu.dot_dimension_numbers<[1], [0], [0], [1], [0, 0, 1, 1], [], []>} : vector<16x32xbf16>, vector<32x128xbf16>, vector<16x128xf32> -> vector<16x128xf32>
    %c0_3 = arith.constant 0 : index
    %c0_4 = arith.constant 0 : index
    %3 = vector.load %arg6[%c0_3, %c0_4] : memref<4x128xf32, #tpu.memory_space<vmem>>, vector<1x128xf32>
    %4 = vector.broadcast %3 : vector<1x128xf32> to vector<16x128xf32>
    %5 = arith.addf %2, %4 : vector<16x128xf32>
    %cst_5 = arith.constant 0.000000e+00 : f32
    %6 = vector.broadcast %cst_5 : f32 to vector<16x128xf32>
    %7 = arith.maximumf %5, %6 : vector<16x128xf32>
    %8 = arith.truncf %7 : vector<16x128xf32> to vector<16x128xbf16>
    %c0_6 = arith.constant 0 : index
    %c0_7 = arith.constant 0 : index
    %9 = vector.load %arg3[%c0_6, %c0_7] : memref<128x128xbf16, #tpu.memory_space<vmem>>, vector<128x128xbf16>
    %cst_8 = arith.constant dense<0.000000e+00> : vector<16x128xf32>
    %10 = tpu.matmul %8, %9, %cst_8 {dimension_numbers = #tpu.dot_dimension_numbers<[1], [0], [0], [1], [0, 0, 1, 1], [], []>} : vector<16x128xbf16>, vector<128x128xbf16>, vector<16x128xf32> -> vector<16x128xf32>
    %c1 = arith.constant 1 : index
    %c0_9 = arith.constant 0 : index
    %11 = vector.load %arg6[%c1, %c0_9] : memref<4x128xf32, #tpu.memory_space<vmem>>, vector<1x128xf32>
    %12 = vector.broadcast %11 : vector<1x128xf32> to vector<16x128xf32>
    %13 = arith.addf %10, %12 : vector<16x128xf32>
    %cst_10 = arith.constant 0.000000e+00 : f32
    %14 = vector.broadcast %cst_10 : f32 to vector<16x128xf32>
    %15 = arith.maximumf %13, %14 : vector<16x128xf32>
    %16 = arith.truncf %15 : vector<16x128xf32> to vector<16x128xbf16>
    %c0_11 = arith.constant 0 : index
    %c0_12 = arith.constant 0 : index
    %17 = vector.load %arg4[%c0_11, %c0_12] : memref<128x128xbf16, #tpu.memory_space<vmem>>, vector<128x128xbf16>
    %cst_13 = arith.constant dense<0.000000e+00> : vector<16x128xf32>
    %18 = tpu.matmul %16, %17, %cst_13 {dimension_numbers = #tpu.dot_dimension_numbers<[1], [0], [0], [1], [0, 0, 1, 1], [], []>} : vector<16x128xbf16>, vector<128x128xbf16>, vector<16x128xf32> -> vector<16x128xf32>
    %c2 = arith.constant 2 : index
    %c0_14 = arith.constant 0 : index
    %19 = vector.load %arg6[%c2, %c0_14] : memref<4x128xf32, #tpu.memory_space<vmem>>, vector<1x128xf32>
    %20 = vector.broadcast %19 : vector<1x128xf32> to vector<16x128xf32>
    %21 = arith.addf %18, %20 : vector<16x128xf32>
    %cst_15 = arith.constant 0.000000e+00 : f32
    %22 = vector.broadcast %cst_15 : f32 to vector<16x128xf32>
    %23 = arith.maximumf %21, %22 : vector<16x128xf32>
    %24 = arith.truncf %23 : vector<16x128xf32> to vector<16x128xbf16>
    %c0_16 = arith.constant 0 : index
    %c0_17 = arith.constant 0 : index
    %25 = vector.load %arg5[%c0_16, %c0_17] : memref<128x128xbf16, #tpu.memory_space<vmem>>, vector<128x128xbf16>
    %cst_18 = arith.constant dense<0.000000e+00> : vector<16x128xf32>
    %26 = tpu.matmul %24, %25, %cst_18 {dimension_numbers = #tpu.dot_dimension_numbers<[1], [0], [0], [1], [0, 0, 1, 1], [], []>} : vector<16x128xbf16>, vector<128x128xbf16>, vector<16x128xf32> -> vector<16x128xf32>
    %c3 = arith.constant 3 : index
    %c0_19 = arith.constant 0 : index
    %27 = vector.load %arg6[%c3, %c0_19] : memref<4x128xf32, #tpu.memory_space<vmem>>, vector<1x128xf32>
    %28 = vector.broadcast %27 : vector<1x128xf32> to vector<16x128xf32>
    %29 = arith.addf %26, %28 : vector<16x128xf32>
    %30 = arith.negf %29 : vector<16x128xf32>
    %31 = math.exp %30 : vector<16x128xf32>
    %cst_20 = arith.constant 1.000000e+00 : f32
    %32 = vector.broadcast %cst_20 : f32 to vector<16x128xf32>
    %33 = arith.addf %32, %31 : vector<16x128xf32>
    %34 = arith.divf %32, %33 : vector<16x128xf32>
    %c0_21 = arith.constant 0 : index
    %c0_22 = arith.constant 0 : index
    %35 = vector.load %arg7[%c0_21, %c0_22] : memref<16x128xf32, #tpu.memory_space<vmem>>, vector<16x128xf32>
    tpu.vector_store %arg7[%c0_21, %c0_22], %34 {strides = array<i32>} : memref<16x128xf32, #tpu.memory_space<vmem>>, vector<16x128xf32>,
    return
  }
  func.func @transform_0(%arg0: i32) -> (i32, i32) {
    %c0_i32 = arith.constant 0 : i32
    %c0_i32_0 = arith.constant 0 : i32
    return %arg0, %c0_i32 : i32, i32
  }
  func.func @transform_1(%arg0: i32) -> (i32, i32) {
    %c0_i32 = arith.constant 0 : i32
    %c0_i32_0 = arith.constant 0 : i32
    %c0_i32_1 = arith.constant 0 : i32
    return %c0_i32, %c0_i32_0 : i32, i32
  }
  func.func @transform_2(%arg0: i32) -> (i32, i32) {
    %c0_i32 = arith.constant 0 : i32
    %c0_i32_0 = arith.constant 0 : i32
    %c0_i32_1 = arith.constant 0 : i32
    return %c0_i32, %c0_i32_0 : i32, i32
  }
  func.func @transform_3(%arg0: i32) -> (i32, i32) {
    %c0_i32 = arith.constant 0 : i32
    %c0_i32_0 = arith.constant 0 : i32
    %c0_i32_1 = arith.constant 0 : i32
    return %c0_i32, %c0_i32_0 : i32, i32
  }
  func.func @transform_4(%arg0: i32) -> (i32, i32) {
    %c0_i32 = arith.constant 0 : i32
    %c0_i32_0 = arith.constant 0 : i32
    %c0_i32_1 = arith.constant 0 : i32
    return %c0_i32, %c0_i32_0 : i32, i32
  }
  func.func @transform_5(%arg0: i32) -> (i32, i32) {
    %c0_i32 = arith.constant 0 : i32
    %c0_i32_0 = arith.constant 0 : i32
    %c0_i32_1 = arith.constant 0 : i32
    return %c0_i32, %c0_i32_0 : i32, i32
  }
  func.func @transform_6(%arg0: i32) -> (i32, i32) {
    %c0_i32 = arith.constant 0 : i32
    %c0_i32_0 = arith.constant 0 : i32
    return %arg0, %c0_i32 : i32, i32
  }
}

</mosaic_0001>

<bundles_post_ra>
// kernel: tpu_custom_call.1
= control target key start
LH: loop header
LB: loop body
LE: loop exit
PB: predicated region body
PF: predicated region fallthrough
CT: control target
= control target key end

     0   :  { %11 = vsyncpa [#allocation3], 0  ;;  %s971_s0 = inlined_call_operand.hbm [shape: bf16[16,32], index: 0, kind: input, shape index: {}]   ;;  %s972_s1 = inlined_call_operand.hbm [shape: bf16[32,128], index: 1, kind: input, shape index: {}]   ;;  %s973_s2 = inlined_call_operand.hbm [shape: bf16[128,128], index: 2, kind: input, shape index: {}]   ;;  %s974_s3 = inlined_call_operand.hbm [shape: bf16[128,128], index: 3, kind: input, shape index: {}]   ;;  %s975_s4 = inlined_call_operand.hbm [shape: bf16[128,128], index: 4, kind: input, shape index: {}]   ;;  %s976_s5 = inlined_call_operand.vmem [shape: f32[4,128], index: 5, kind: input, shape index: {}]   ;;  %s977_s6 = inlined_call_operand.hbm [shape: f32[16,128], index: 6, kind: output, shape index: {}]  }
   0x1   :  { %12 = vsyncpa [#allocation6], 0 }
   0x2   :  { %13 = vsyncpa [#allocation9], 0 }
   0x3   :  { %14 = vsyncpa [#allocation4], 0  ;;  %s845_s21 = smov [#allocation5]   ;;  %s846_s23 = smov [#allocation8]  }
   0x4   :  { %s32_s22 = sshll.u32 %s845_s21, 4  ;;  %s56_s24 = sshll.u32 %s846_s23, 4  ;;  %s33_s22 = int_to_ptr.vmem [resolvable:$true] %s32_s22  ;;  %s57_s24 = int_to_ptr.vmem [resolvable:$true] %s56_s24 }
   0x5   :  { %s725_s25 = scalar_lea.vmem %s33_s22, 256  ;;  %p730_p1 = scmp.lt.s32.totalorder %s33_s22, %s33_s22 }
   0x6   :  { %p726_p0 = scmp.ne.s32.totalorder %s33_s22, %s725_s25  ;;  %p731_p2 = scmp.lt.s32.totalorder %s725_s25, %s725_s25 }
   0x8   :  { %p732_p3 = por %p731_p2, %p730_p1 }
   0xa   :  { %p733_p4 = pnand %p732_p3, %p726_p0 }
   0xc   :  { %736 = shalt.err (!%p733_p4)
}
   0xd   :  { %s847_s26 = smov 64   ;;  %s848_s27 = smov 4  }
   0xe   :  { %38 = dma.hbm_to_vmem [thread:$0]  %s972_s1, 256, %s33_s22, [#allocation6], %s847_s26, %s847_s26, %s848_s27  }
   0xf   :  { %s745_s30 = scalar_lea.vmem %s57_s24, 1024  ;;  %p750_p6 = scmp.lt.s32.totalorder %s57_s24, %s57_s24 }
  0x10   :  { %p746_p5 = scmp.ne.s32.totalorder %s57_s24, %s745_s30  ;;  %p751_p7 = scmp.lt.s32.totalorder %s745_s30, %s745_s30 }
  0x12   :  { %p752_p8 = por %p751_p7, %p750_p6 }
  0x14   :  { %p753_p9 = pnand %p752_p8, %p746_p5 }
  0x16   :  { %756 = shalt.err (!%p753_p9)
}
  0x17   :  { %62 = dma.hbm_to_vmem [thread:$0]  %s974_s3, 1024, %s57_s24, [#allocation9], %s847_s26, %s847_s26, %s848_s27  }
  0x18   :  { %s849_s9 = smov [#allocation2]   ;;  %s850_s11 = smov [#allocation7]  }
  0x19   :  { %s20_s10 = sshll.u32 %s849_s9, 4  ;;  %s44_s12 = sshll.u32 %s850_s11, 4  ;;  %s21_s10 = int_to_ptr.vmem [resolvable:$true] %s20_s10  ;;  %s45_s12 = int_to_ptr.vmem [resolvable:$true] %s44_s12 }
  0x1a   :  { %s765_s1 = scalar_lea.vmem %s21_s10, 128  ;;  %p770_p11 = scmp.lt.s32.totalorder %s21_s10, %s21_s10 }
  0x1b   :  { %p766_p10 = scmp.ne.s32.totalorder %s21_s10, %s765_s1  ;;  %p771_p12 = scmp.lt.s32.totalorder %s765_s1, %s765_s1 }
  0x1d   :  { %p772_p13 = por %p771_p12, %p770_p11 }
  0x1f   :  { %p773_p0 = pnand %p772_p13, %p766_p10 }
  0x21   :  { %776 = shalt.err (!%p773_p0)
}
  0x22   :  { %26 = dma.hbm_to_vmem [thread:$0]  %s971_s0, 128, %s21_s10, [#allocation3], %s847_s26, %s847_s26, %s848_s27  }
  0x23   :  { %s785_s3 = scalar_lea.vmem %s45_s12, 1024  ;;  %p790_p2 = scmp.lt.s32.totalorder %s45_s12, %s45_s12 }
  0x24   :  { %p786_p1 = scmp.ne.s32.totalorder %s45_s12, %s785_s3  ;;  %p791_p3 = scmp.lt.s32.totalorder %s785_s3, %s785_s3 }
  0x26   :  { %p792_p4 = por %p791_p3, %p790_p2 }
  0x28   :  { %p793_p5 = pnand %p792_p4, %p786_p1 }
  0x2a   :  { %796 = shalt.err (!%p793_p5)
}
  0x2b   :  { %50 = dma.hbm_to_vmem [thread:$0]  %s973_s2, 1024, %s45_s12, [#allocation6], %s847_s26, %s847_s26, %s848_s27  }
  0x2c   :  { %s851_s17 = smov [#allocation10]  }
  0x2d   :  { %s68_s18 = sshll.u32 %s851_s17, 4  ;;  %s69_s18 = int_to_ptr.vmem [resolvable:$true] %s68_s18 }
  0x2e   :  { %s805_s19 = scalar_lea.vmem %s69_s18, 1024  ;;  %p810_p7 = scmp.lt.s32.totalorder %s69_s18, %s69_s18 }
  0x2f   :  { %p806_p6 = scmp.ne.s32.totalorder %s69_s18, %s805_s19  ;;  %p811_p8 = scmp.lt.s32.totalorder %s805_s19, %s805_s19 }
  0x31   :  { %p812_p9 = por %p811_p8, %p810_p7 }
  0x33   :  { %p813_p10 = pnand %p812_p9, %p806_p6 }
  0x35   :  { %816 = shalt.err (!%p813_p10)
}
  0x36   :  { %74 = dma.hbm_to_vmem [thread:$0]  %s975_s4, 1024, %s69_s18, [#allocation9], %s847_s26, %s847_s26, %s848_s27  }
  0x37   :  { %837 = dma.done.wait [#allocation3], 128  }
  0x38   :  { %838 = vsyncadd [#allocation3], 4294967168 }
  0x39   :  { %839 = dma.done.wait [#allocation6], 1280  }
  0x3a   :  { %840 = vsyncadd [#allocation6], 4294966016 }
  0x3b   :  { %841 = dma.done.wait [#allocation9], 2048  }
  0x3c   :  { %842 = vsyncadd [#allocation9], 4294965248  ;;  %v852_v0 = vmov 0.0   ;;  %vm853_vm0 = vmmov 0   ;;  %v682_v1 = vld [vmem:[#allocation5 + $0x8] sm:$0xff]   ;;  %v683_v2 = vld [vmem:[#allocation5] sm:$0xff]  }
  0x3d   :  { %602 = vmatprep.subr.bf16.mxu0 %v852_v0  ;;  %606 = vmatprep.mubr.msk.bf16.mxu0 %vm853_vm0, %v852_v0  ;;  %v685_v3 = vld [vmem:[#allocation7 + $0x38] sm:$0xff]   ;;  %v684_v4 = vld [vmem:[#allocation2] sm:$0xff]   ;;  %v686_v5 = vld [vmem:[#allocation7 + $0x30] sm:$0xff]   ;;  %vm121_vm1 = vcmask 261120   ;;  %s854_s27 = smov [#allocation11]  }
  0x3e   :  { %610 = vmatprep.subr.bf16.mxu1 %v852_v0  ;;  %626 = vmatprep.mubr.msk.bf16.mxu1 %vm853_vm0, %v852_v0  ;;  %v687_v6 = vld [vmem:[#allocation7 + $0x28] sm:$0xff]   ;;  %v688_v7 = vld [vmem:[#allocation7 + $0x20] sm:$0xff]   ;;  %v689_v8 = vld [vmem:[#allocation7 + $0x18] sm:$0xff]   ;;  %s524_s28 = sshll.u32 %s854_s27, 4  ;;  %s525_s28 = int_to_ptr.vmem [resolvable:$true] %s524_s28 }
  0x3f   :  { %603 = vmatpush3.bf16.msra.mxu0 %v682_v1  ;;  %611 = vmatpush3.bf16.msra.mxu1 %v685_v3  ;;  %v690_v9 = vld [vmem:[#allocation7 + $0x10] sm:$0xff]   ;;  %v691_v10 = vld [vmem:[#allocation7 + $0x8] sm:$0xff]   ;;  %v692_v11 = vld [vmem:[#allocation7] sm:$0xff]   ;;  %p822_p12 = scmp.lt.s32.totalorder %s525_s28, %s525_s28 }
  0x40   :  { %604 = vmatprep.subr.bf16.mxu0 %v852_v0  ;;  %612 = vmatprep.subr.bf16.mxu1 %v852_v0  ;;  %v693_v12 = vld [vmem:[#allocation8 + $0x38] sm:$0xff]   ;;  %v694_v13 = vld [vmem:[#allocation8 + $0x30] sm:$0xff]   ;;  %v695_v14 = vld [vmem:[#allocation8 + $0x28] sm:$0xff]  }
  0x41   :  { %v696_v15 = vld [vmem:[#allocation8 + $0x20] sm:$0xff]   ;;  %v697_v16 = vld [vmem:[#allocation8 + $0x18] sm:$0xff]   ;;  %v538_v17 = vld [vmem:[%s976_s5] ss:$0 sm:$0xff] }
  0x42   :  { %v698_v27 = vld [vmem:[#allocation8 + $0x10] sm:$0xff]   ;;  %v699_v28 = vld [vmem:[#allocation8 + $0x8] sm:$0xff]   ;;  %v700_v29 = vld [vmem:[#allocation8] sm:$0xff]  }
  0x43   :  { %605 = vmatpush3.bf16.msra.mxu0 %v683_v2  ;;  %613 = vmatpush3.bf16.msra.mxu1 %v686_v5  ;;  %v701_v30 = vld [vmem:[#allocation10 + $0x38] sm:$0xff]   ;;  %v702_v31 = vld [vmem:[#allocation10 + $0x30] sm:$0xff]   ;;  %v703_v32 = vld [vmem:[#allocation10 + $0x28] sm:$0xff]  }
  0x44   :  { %630 = vmatprep.subr.bf16.mxu0 %v852_v0  ;;  %614 = vmatprep.subr.bf16.mxu1 %v852_v0  ;;  %v704_v33 = vld [vmem:[#allocation10 + $0x20] sm:$0xff]   ;;  %v705_v34 = vld [vmem:[#allocation10 + $0x18] sm:$0xff]   ;;  %v543_v35 = vld [vmem:[%s976_s5 + $0x1] ss:$0 sm:$0xff] }
  0x45   :  { %v706_v45 = vld [vmem:[#allocation10 + $0x10] sm:$0xff]   ;;  %v707_v46 = vld [vmem:[#allocation10 + $0x8] sm:$0xff]   ;;  %v708_v47 = vld [vmem:[#allocation10] sm:$0xff]  }
  0x46   :  { %607 = vmatmul.mubr.msk.bf16.vlgmr.msra.gmra.mxu0 %vm121_vm1, %v684_v4  ;;  %v552_v48 = vld [vmem:[%s976_s5 + $0x2] ss:$0 sm:$0xff]  ;;  %v561_v58 = vld [vmem:[%s976_s5 + $0x3] ss:$0 sm:$0xff]  ;;  %s817_s5 = scalar_lea.vmem %s525_s28, 256 }
  0x47   :  { %646 = vmatprep.mubr.msk.bf16.mxu0 %vm853_vm0, %v852_v0  ;;  %615 = vmatpush3.bf16.msra.mxu1 %v687_v6  ;;  %p818_p11 = scmp.ne.s32.totalorder %s525_s28, %s817_s5  ;;  %p823_p13 = scmp.lt.s32.totalorder %s817_s5, %s817_s5 }
  0x48   :  { %616 = vmatprep.subr.bf16.mxu1 %v852_v0  ;;  %631 = vmatpush3.bf16.msra.mxu0 %v693_v12 }
  0x49   :  { %632 = vmatprep.subr.bf16.mxu0 %v852_v0  ;;  %p824_p0 = por %p823_p13, %p822_p12 }
  0x4b   :  { %617 = vmatpush3.bf16.msra.mxu1 %v688_v7  ;;  %p825_p1 = pnand %p824_p0, %p818_p11 }
  0x4c   :  { %618 = vmatprep.subr.bf16.mxu1 %v852_v0  ;;  %633 = vmatpush3.bf16.msra.mxu0 %v694_v13 }
  0x4d   :  { %634 = vmatprep.subr.bf16.mxu0 %v852_v0 }
  0x4f   :  { %619 = vmatpush3.bf16.msra.mxu1 %v689_v8 }
  0x50   :  { %620 = vmatprep.subr.bf16.mxu1 %v852_v0  ;;  %635 = vmatpush3.bf16.msra.mxu0 %v695_v14 }
  0x51   :  { %636 = vmatprep.subr.bf16.mxu0 %v852_v0 }
  0x53   :  { %621 = vmatpush3.bf16.msra.mxu1 %v690_v9 }
  0x54   :  { %622 = vmatprep.subr.bf16.mxu1 %v852_v0  ;;  %637 = vmatpush3.bf16.msra.mxu0 %v696_v15 }
  0x55   :  { %638 = vmatprep.subr.bf16.mxu0 %v852_v0 }
  0x57   :  { %623 = vmatpush3.bf16.msra.mxu1 %v691_v10 }
  0x58   :  { %624 = vmatprep.subr.bf16.mxu1 %v852_v0  ;;  %639 = vmatpush3.bf16.msra.mxu0 %v697_v16 }
  0x59   :  { %640 = vmatprep.subr.bf16.mxu0 %v852_v0 }
  0x5b   :  { %625 = vmatpush3.bf16.msra.mxu1 %v692_v11 }
  0x5c   :  { %650 = vmatprep.subr.bf16.mxu1 %v852_v0  ;;  %641 = vmatpush3.bf16.msra.mxu0 %v698_v27 }
  0x5d   :  { %642 = vmatprep.subr.bf16.mxu0 %v852_v0 }
  0x60   :  { %643 = vmatpush3.bf16.msra.mxu0 %v699_v28 }
  0x61   :  { %644 = vmatprep.subr.bf16.mxu0 %v852_v0 }
  0x64   :  { %645 = vmatpush3.bf16.msra.mxu0 %v700_v29 }
 0x106   :  { %v159_v18 = vpop.f32.mrf.mxu0 }
 0x107   :  { %v160_v20 = vadd.f32 %v538_v17, %v159_v18 }
 0x108   :  { %v608_v19 = vpop.f32.mrf.mxu0 }
 0x109   :  { %v166_v24 = vmax.f32 %v160_v20, 0.0 }
 0x10a   :  { %v162_v21 = vpop.f32.mrf.mxu0 }
 0x10b   :  { %v163_v22 = vadd.f32 %v538_v17, %v162_v21 }
 0x10c   :  { %v609_v23 = vpop.f32.mrf.mxu0 }
 0x10d   :  { %v167_v25 = vmax.f32 %v163_v22, 0.0 }
 0x10f   :  { %v168_v26 = vpack.c.bf16 %v167_v25, %v166_v24 }
 0x111   :  { %627 = vmatmul.mubr.bf16.vlgmr.msra.gmra.mxu1 %v168_v26 }
 0x112   :  { %666 = vmatprep.mubr.msk.bf16.mxu1 %vm853_vm0, %v852_v0  ;;  %651 = vmatpush3.bf16.msra.mxu1 %v701_v30 }
 0x113   :  { %652 = vmatprep.subr.bf16.mxu1 %v852_v0 }
 0x116   :  { %653 = vmatpush3.bf16.msra.mxu1 %v702_v31 }
 0x117   :  { %654 = vmatprep.subr.bf16.mxu1 %v852_v0 }
 0x11a   :  { %655 = vmatpush3.bf16.msra.mxu1 %v703_v32 }
 0x11b   :  { %656 = vmatprep.subr.bf16.mxu1 %v852_v0 }
 0x11e   :  { %657 = vmatpush3.bf16.msra.mxu1 %v704_v33 }
 0x11f   :  { %658 = vmatprep.subr.bf16.mxu1 %v852_v0 }
 0x122   :  { %659 = vmatpush3.bf16.msra.mxu1 %v705_v34 }
 0x123   :  { %660 = vmatprep.subr.bf16.mxu1 %v852_v0 }
 0x126   :  { %661 = vmatpush3.bf16.msra.mxu1 %v706_v45 }
 0x127   :  { %662 = vmatprep.subr.bf16.mxu1 %v852_v0 }
 0x12a   :  { %663 = vmatpush3.bf16.msra.mxu1 %v707_v46 }
 0x12b   :  { %664 = vmatprep.subr.bf16.mxu1 %v852_v0 }
 0x12e   :  { %665 = vmatpush3.bf16.msra.mxu1 %v708_v47 }
 0x1d1   :  { %v272_v36 = vpop.f32.mrf.mxu1 }
 0x1d2   :  { %v273_v38 = vadd.f32 %v543_v35, %v272_v36 }
 0x1d3   :  { %v628_v37 = vpop.f32.mrf.mxu1 }
 0x1d4   :  { %v279_v42 = vmax.f32 %v273_v38, 0.0 }
 0x1d5   :  { %v275_v39 = vpop.f32.mrf.mxu1 }
 0x1d6   :  { %v276_v40 = vadd.f32 %v543_v35, %v275_v39 }
 0x1d7   :  { %v629_v41 = vpop.f32.mrf.mxu1 }
 0x1d8   :  { %v280_v43 = vmax.f32 %v276_v40, 0.0 }
 0x1da   :  { %v281_v44 = vpack.c.bf16 %v280_v43, %v279_v42 }
 0x1dc   :  { %647 = vmatmul.mubr.bf16.vlgmr.msra.gmra.mxu0 %v281_v44 }
 0x29c   :  { %v385_v49 = vpop.f32.mrf.mxu0 }
 0x29d   :  { %v386_v51 = vadd.f32 %v552_v48, %v385_v49 }
 0x29e   :  { %v648_v50 = vpop.f32.mrf.mxu0 }
 0x29f   :  { %v392_v55 = vmax.f32 %v386_v51, 0.0 }
 0x2a0   :  { %v388_v52 = vpop.f32.mrf.mxu0 }
 0x2a1   :  { %v389_v53 = vadd.f32 %v552_v48, %v388_v52 }
 0x2a2   :  { %v649_v54 = vpop.f32.mrf.mxu0 }
 0x2a3   :  { %v393_v56 = vmax.f32 %v389_v53, 0.0 }
 0x2a5   :  { %v394_v57 = vpack.c.bf16 %v393_v56, %v392_v55 }
 0x2a7   :  { %667 = vmatmul.mubr.bf16.vlgmr.msra.gmra.mxu1 %v394_v57 }
 0x367   :  { %v498_v59 = vpop.f32.mrf.mxu1 }
 0x368   :  { %v499_v60 = vadd.f32 %v561_v58, %v498_v59 }
 0x369   :  { %v668_v61 = vpop.f32.mrf.mxu1 }
 0x36a   :  { %v570_v62 = vmul.f32 -1.442695, %v499_v60 }
 0x36b   :  { %v501_v63 = vpop.f32.mrf.mxu1 }
 0x36c   :  { %709 = vpow2.f32 %v570_v62  ;;  %v502_v0 = vadd.f32 %v561_v58, %v501_v63 }
 0x36d   :  { %v669_v1 = vpop.f32.mrf.mxu1 }
 0x36e   :  { %v571_v2 = vmul.f32 -1.442695, %v502_v0 }
 0x370   :  { %711 = vpow2.f32 %v571_v2 }
 0x379   :  { %v710_v3 = vpop.eup %709 }
 0x37a   :  { %v511_v4 = vadd.f32 1.0, %v710_v3 }
 0x37c   :  { %713 = vrcp.f32 %v511_v4 }
 0x37d   :  { %v712_v5 = vpop.eup %711 }
 0x37e   :  { %v512_v6 = vadd.f32 1.0, %v712_v5 }
 0x380   :  { %715 = vrcp.f32 %v512_v6 }
 0x389   :  { %v714_v7 = vpop.eup %713 }
 0x38a   :  { %517 = vst [vmem:[#allocation11] sm:$0xff] %v714_v7 }
 0x38d   :  { %v716_v8 = vpop.eup %715 }
 0x38e   :  { %518 = vst [vmem:[#allocation11 + $0x8] sm:$0xff] %v716_v8 }
 0x38f   :  { %828 = shalt.err (!%p825_p1)
}
 0x390   :  { %s855_s29 = smov 128   ;;  %s856_s30 = smov 8  }
 0x391   :  { %530 = dma.vmem_to_hbm [thread:$0]  %s525_s28, 256, %s977_s6, [#allocation4], %s855_s29, %s855_s29, %s856_s30  }
 0x392   :  { %843 = dma.done.wait [#allocation4], 256  }
 0x393   :  { %844 = vsyncadd [#allocation4], 4294967040 }
 0x394   :  { %534 = vsyncpa [#allocation3], 1 }
 0x395   :  { %535 = vsyncpa [#allocation6], 1 }
 0x396   :  { %536 = vsyncpa [#allocation9], 1 }
 0x397   :  { %537 = vsyncpa [#allocation4], 1 }

</bundles_post_ra>
